<compile_context>
chip_gen: v7x
topology: tpu7x:2x2x1
jax: 0.10.0
libtpu: 0.0.40
codegen_flags: <defaults>
</compile_context>

<pallas_src>
import jax
import jax.numpy as jnp
from jax.experimental import pallas as pl
from jax.experimental.pallas import tpu as pltpu

# ---- constants mirroring HumanRecon.__init__ (small synthetic cam_params) ----
RGB_MEAN = (0.485, 0.456, 0.406)
RGB_STD = (0.229, 0.224, 0.225)
DEPTH_SCALE = 128.0

RES = 16            # cam_params['width']
VOXEL = 16          # cam_params['voxel_size']
REAL_DIST = 200.0   # cam_params['real_dist']
Z_MIN = REAL_DIST - 64.0
Z_MAX = REAL_DIST + 64.0

H = W = RES
HW = H * W
assert (W & (W - 1)) == 0, "W must be a power of two for in-kernel index math"
LOG2_W = W.bit_length() - 1

INV_255 = 1.0 / 255.0
INV_729 = 1.0 / 729.0            # (1/27)^2 : two box-filter iterations folded
Z_STEP = (Z_MAX - Z_MIN) / VOXEL

# packed-row layout (input and elementwise output share it)
PACK_ROWS = 16
ROW_IMG = 0      # rows 0..2 : image channels
ROW_MASK = 3     # row 3     : mask
ROW_DEPTH = 4    # rows 4..5 : pred depth front / back
ROW_COLOR = 6    # rows 6..8 : pred color front channels
N_USED = 9       # rows 9..15: zero padding


# --------------------------------- kernel -----------------------------------
def human_recon_fused_kernel(in_ref, out_ref, vol_ref):
    x = in_ref[...]                                            # (16, HW) f32
    row = jax.lax.broadcasted_iota(jnp.int32, (PACK_ROWS, 1), 0)

    def ch_const(off, c0, c1, c2):
        return jnp.where(row == off, c0,
               jnp.where(row == off + 1, c1,
               jnp.where(row == off + 2, c2, 0.0)))

    inv_std_img = ch_const(ROW_IMG, *(1.0 / s for s in RGB_STD))
    mean_img = ch_const(ROW_IMG, *RGB_MEAN)
    std_col = ch_const(ROW_COLOR, *RGB_STD)
    mean_col = ch_const(ROW_COLOR, *RGB_MEAN)

    is_img = row < ROW_MASK
    is_mask = row == ROW_MASK
    is_depth = (row >= ROW_DEPTH) & (row < ROW_COLOR)
    is_color = (row >= ROW_COLOR) & (row < N_USED)

    # "/255 if max > 1" hoisted to one cross-lane max + one scalar select each.
    img_max = jnp.max(jnp.where(is_img, x, -jnp.inf))
    img_scale = jnp.where(img_max > 1.0, INV_255, 1.0)
    mask_max = jnp.max(jnp.where(is_mask, x, -jnp.inf))
    mask_scale = jnp.where(mask_max > 1.0, INV_255, 1.0)

    m_n = x[ROW_MASK:ROW_MASK + 1, :] * mask_scale             # (1, HW)

    # Single fused per-row affine over the whole packed tile:
    #   y = (x * a + b1) * m_factor + b2 , then clamp(>=0) on the color rows.
    a_row = jnp.where(is_img, img_scale * inv_std_img,
            jnp.where(is_mask, mask_scale,
            jnp.where(is_depth, DEPTH_SCALE,
            jnp.where(is_color, std_col, 0.0))))
    b1_row = jnp.where(is_img, -mean_img * inv_std_img,
             jnp.where(is_depth, REAL_DIST - 0.5 * DEPTH_SCALE, 0.0))
    b2_row = jnp.where(is_color, mean_col, 0.0)
    m_factor = jnp.where(is_depth | is_color, m_n, 1.0)        # (16, HW)

    y = (x * a_row + b1_row) * m_factor + b2_row
    y = jnp.where(is_color, jnp.maximum(y, 0.0), y)
    out_ref[...] = y                                           # one full store

    # ---- occupancy volume (stand-in for external depth2occ_2view_torch) ----
    # TODO(synk): deterministic front/back-depth stand-in for the external op.
    df_m = y[ROW_DEPTH:ROW_DEPTH + 1, :]                       # (1, HW) metric
    db_m = y[ROW_DEPTH + 1:ROW_DEPTH + 2, :]
    m_pos = m_n > 0.0

    z_idx = jax.lax.broadcasted_iota(jnp.int32, (VOXEL, HW), 0)
    lane = jax.lax.broadcasted_iota(jnp.int32, (VOXEL, HW), 1)
    h_idx = lane >> LOG2_W
    w_idx = lane & (W - 1)
    zf = z_idx.astype(jnp.float32)

    def occ_at(s):
        # occupancy evaluated at voxel index (z - s); equals rolling the
        # volume by s along Z since the volume is an analytic function of z.
        zval = Z_MIN + Z_STEP * (zf - s)
        inside = (zval >= df_m) & (zval <= db_m) & m_pos
        return jnp.where(inside, 1.0, -1.0)

    # ---- folded 3x3x3 box filter (iter=2, zero padding) == separable 5-tap
    # [1,2,3,2,1] per axis, scaled by 1/729.
    # Z axis: analytic shifts (no rolls, no matmul), zero padding via z bounds.
    vz = 3.0 * occ_at(0)
    vz = vz + 2.0 * jnp.where(z_idx >= 1, occ_at(1), 0.0)
    vz = vz + 2.0 * jnp.where(z_idx <= VOXEL - 2, occ_at(-1), 0.0)
    vz = vz + jnp.where(z_idx >= 2, occ_at(2), 0.0)
    vz = vz + jnp.where(z_idx <= VOXEL - 3, occ_at(-2), 0.0)

    # H / W axes: XLU lane rolls on the flattened (h*W + w) axis + bound masks.
    def shifted(v, s, unit, pos, n):
        # result[(.., pos)] = v[pos - s] along the logical axis (stride `unit`
        # in the flat lane axis), zero-padded at the boundaries.
        r = pltpu.roll(v, (s * unit) % HW, axis=1)
        if s > 0:
            return jnp.where(pos >= s, r, 0.0)
        return jnp.where(pos <= n - 1 + s, r, 0.0)

    def conv5(v, unit, pos, n):
        return (3.0 * v
                + 2.0 * (shifted(v, 1, unit, pos, n) + shifted(v, -1, unit, pos, n))
                + shifted(v, 2, unit, pos, n) + shifted(v, -2, unit, pos, n))

    vzh = conv5(vz, W, h_idx, H)      # along H (lane stride W)
    vzhw = conv5(vzh, 1, w_idx, W)    # along W (lane stride 1)
    vol_ref[...] = vzhw * INV_729


# --------------------------------- wrapper ----------------------------------
@jax.jit
def human_recon_forward(image_hwc, depth_front_hwc, depth_back_hwc, mask_hwc,
                        pred_depth_chw, pred_color_chw):
    """Deterministic math of HumanRecon.forward / evaluate (networks stubbed)."""
    h, w = image_hwc.shape[0], image_hwc.shape[1]
    assert (h, w) == (H, W)
    # TODO(synk): depth_front_hwc / depth_back_hwc only feed the stubbed
    # networks (self.model / self.model_C); their synthetic outputs arrive via
    # pred_depth_chw / pred_color_chw.

    # Pack everything into one lane-dense (16, HW) tile (single DMA channel).
    im_mask = jnp.concatenate([image_hwc.astype(jnp.float32),
                               mask_hwc.astype(jnp.float32)], axis=-1)   # (H,W,4)
    im_mask = jnp.transpose(im_mask, (2, 0, 1)).reshape(4, HW)
    packed = jnp.concatenate([
        im_mask,
        pred_depth_chw.astype(jnp.float32).reshape(2, HW),
        pred_color_chw.astype(jnp.float32).reshape(3, HW),
        jnp.zeros((PACK_ROWS - N_USED, HW), jnp.float32),
    ], axis=0)                                                           # (16, HW)

    out_packed, vol = pl.pallas_call(
        human_recon_fused_kernel,
        out_shape=(jax.ShapeDtypeStruct((PACK_ROWS, HW), jnp.float32),
                   jax.ShapeDtypeStruct((VOXEL, HW), jnp.float32)),
    )(packed)

    image_input = out_packed[ROW_IMG:ROW_IMG + 3].reshape(3, H, W)
    mask_input = out_packed[ROW_MASK:ROW_MASK + 1].reshape(1, H, W)
    depth_metric = out_packed[ROW_DEPTH:ROW_DEPTH + 2].reshape(2, H, W)
    color_front = out_packed[ROW_COLOR:ROW_COLOR + 3].reshape(3, H, W)
    filtered_volume = jnp.transpose(vol.reshape(VOXEL, H, W), (1, 2, 0))  # (H,W,Z)

    # TODO(synk): marching cubes / trimesh / grid_interp / PIL resize / ESR
    # super-resolution stages have no Pallas equivalent and are omitted.
    return image_input, mask_input, depth_metric, filtered_volume, color_front


# ----------------------------------- main ------------------------------------
if __name__ == "__main__":
    key = jax.random.PRNGKey(0)
    k1, k2, k3, k4, k5, k6 = jax.random.split(key, 6)

    # HWC inputs (what HumanRecon.forward receives before permuting)
    image = jax.random.uniform(k1, (H, W, 3), jnp.float32, 0.0, 255.0)
    mask = (jax.random.uniform(k2, (H, W, 1)) > 0.3).astype(jnp.float32) * 255.0
    depth_front = jax.random.uniform(k3, (H, W, 1), jnp.float32, 0.40, 0.50)
    depth_back = jax.random.uniform(k4, (H, W, 1), jnp.float32, 0.50, 0.60)

    # Deterministic synthetic stand-ins for network outputs (see TODOs above)
    pred_depth = jnp.clip(
        jnp.concatenate([jnp.transpose(depth_front, (2, 0, 1)),
                         jnp.transpose(depth_back, (2, 0, 1))], axis=0)
        + 0.01 * jax.random.normal(k5, (2, H, W), jnp.float32), 0.0, 1.0)
    pred_color = jax.random.normal(k6, (3, H, W), jnp.float32)

    outs = human_recon_forward(image, depth_front, depth_back, mask,
                               pred_depth, pred_color)
    for o in outs:
        jax.block_until_ready(o)

    print("KERNEL_OK")
</pallas_src>

<mosaic_0001>
module attributes {stable_mosaic.version = 11 : i64} {
  func.func @human_recon_fused_kernel(%arg0: memref<16x256xf32, #tpu.memory_space<vmem>>, %arg1: memref<16x256xf32, #tpu.memory_space<vmem>>, %arg2: memref<16x256xf32, #tpu.memory_space<vmem>>) attributes {dimension_semantics = [], scalar_prefetch = 0 : i64, scratch_operands = 0 : i64, tpu.core_type = #tpu.core_type<tc>} {
    %c0 = arith.constant 0 : index
    %c0_0 = arith.constant 0 : index
    %0 = vector.load %arg0[%c0, %c0_0] : memref<16x256xf32, #tpu.memory_space<vmem>>, vector<16x256xf32>
    %1 = tpu.iota {dimensions = array<i32: 0>} : vector<16x1xi32>
    %c0_i32 = arith.constant 0 : i32
    %2 = vector.broadcast %c0_i32 : i32 to vector<16x1xi32>
    %3 = arith.cmpi eq, %1, %2 : vector<16x1xi32>
    %c1_i32 = arith.constant 1 : i32
    %4 = vector.broadcast %c1_i32 : i32 to vector<16x1xi32>
    %5 = arith.cmpi eq, %1, %4 : vector<16x1xi32>
    %c2_i32 = arith.constant 2 : i32
    %6 = vector.broadcast %c2_i32 : i32 to vector<16x1xi32>
    %7 = arith.cmpi eq, %1, %6 : vector<16x1xi32>
    %cst = arith.constant 4.44444466 : f32
    %cst_1 = arith.constant 0.000000e+00 : f32
    %8 = vector.broadcast %cst : f32 to vector<16x1xf32>
    %9 = vector.broadcast %cst_1 : f32 to vector<16x1xf32>
    %10 = arith.select %7, %8, %9 : vector<16x1xi1>, vector<16x1xf32>
    %cst_2 = arith.constant 4.46428585 : f32
    %11 = vector.broadcast %cst_2 : f32 to vector<16x1xf32>
    %12 = arith.select %5, %11, %10 : vector<16x1xi1>, vector<16x1xf32>
    %cst_3 = arith.constant 4.36681223 : f32
    %13 = vector.broadcast %cst_3 : f32 to vector<16x1xf32>
    %14 = arith.select %3, %13, %12 : vector<16x1xi1>, vector<16x1xf32>
    %c0_i32_4 = arith.constant 0 : i32
    %15 = vector.broadcast %c0_i32_4 : i32 to vector<16x1xi32>
    %16 = arith.cmpi eq, %1, %15 : vector<16x1xi32>
    %c1_i32_5 = arith.constant 1 : i32
    %17 = vector.broadcast %c1_i32_5 : i32 to vector<16x1xi32>
    %18 = arith.cmpi eq, %1, %17 : vector<16x1xi32>
    %c2_i32_6 = arith.constant 2 : i32
    %19 = vector.broadcast %c2_i32_6 : i32 to vector<16x1xi32>
    %20 = arith.cmpi eq, %1, %19 : vector<16x1xi32>
    %cst_7 = arith.constant 4.060000e-01 : f32
    %cst_8 = arith.constant 0.000000e+00 : f32
    %21 = vector.broadcast %cst_7 : f32 to vector<16x1xf32>
    %22 = vector.broadcast %cst_8 : f32 to vector<16x1xf32>
    %23 = arith.select %20, %21, %22 : vector<16x1xi1>, vector<16x1xf32>
    %cst_9 = arith.constant 4.560000e-01 : f32
    %24 = vector.broadcast %cst_9 : f32 to vector<16x1xf32>
    %25 = arith.select %18, %24, %23 : vector<16x1xi1>, vector<16x1xf32>
    %cst_10 = arith.constant 4.850000e-01 : f32
    %26 = vector.broadcast %cst_10 : f32 to vector<16x1xf32>
    %27 = arith.select %16, %26, %25 : vector<16x1xi1>, vector<16x1xf32>
    %c6_i32 = arith.constant 6 : i32
    %28 = vector.broadcast %c6_i32 : i32 to vector<16x1xi32>
    %29 = arith.cmpi eq, %1, %28 : vector<16x1xi32>
    %c7_i32 = arith.constant 7 : i32
    %30 = vector.broadcast %c7_i32 : i32 to vector<16x1xi32>
    %31 = arith.cmpi eq, %1, %30 : vector<16x1xi32>
    %c8_i32 = arith.constant 8 : i32
    %32 = vector.broadcast %c8_i32 : i32 to vector<16x1xi32>
    %33 = arith.cmpi eq, %1, %32 : vector<16x1xi32>
    %cst_11 = arith.constant 2.250000e-01 : f32
    %cst_12 = arith.constant 0.000000e+00 : f32
    %34 = vector.broadcast %cst_11 : f32 to vector<16x1xf32>
    %35 = vector.broadcast %cst_12 : f32 to vector<16x1xf32>
    %36 = arith.select %33, %34, %35 : vector<16x1xi1>, vector<16x1xf32>
    %cst_13 = arith.constant 2.240000e-01 : f32
    %37 = vector.broadcast %cst_13 : f32 to vector<16x1xf32>
    %38 = arith.select %31, %37, %36 : vector<16x1xi1>, vector<16x1xf32>
    %cst_14 = arith.constant 2.290000e-01 : f32
    %39 = vector.broadcast %cst_14 : f32 to vector<16x1xf32>
    %40 = arith.select %29, %39, %38 : vector<16x1xi1>, vector<16x1xf32>
    %c6_i32_15 = arith.constant 6 : i32
    %41 = vector.broadcast %c6_i32_15 : i32 to vector<16x1xi32>
    %42 = arith.cmpi eq, %1, %41 : vector<16x1xi32>
    %c7_i32_16 = arith.constant 7 : i32
    %43 = vector.broadcast %c7_i32_16 : i32 to vector<16x1xi32>
    %44 = arith.cmpi eq, %1, %43 : vector<16x1xi32>
    %c8_i32_17 = arith.constant 8 : i32
    %45 = vector.broadcast %c8_i32_17 : i32 to vector<16x1xi32>
    %46 = arith.cmpi eq, %1, %45 : vector<16x1xi32>
    %cst_18 = arith.constant 4.060000e-01 : f32
    %cst_19 = arith.constant 0.000000e+00 : f32
    %47 = vector.broadcast %cst_18 : f32 to vector<16x1xf32>
    %48 = vector.broadcast %cst_19 : f32 to vector<16x1xf32>
    %49 = arith.select %46, %47, %48 : vector<16x1xi1>, vector<16x1xf32>
    %cst_20 = arith.constant 4.560000e-01 : f32
    %50 = vector.broadcast %cst_20 : f32 to vector<16x1xf32>
    %51 = arith.select %44, %50, %49 : vector<16x1xi1>, vector<16x1xf32>
    %cst_21 = arith.constant 4.850000e-01 : f32
    %52 = vector.broadcast %cst_21 : f32 to vector<16x1xf32>
    %53 = arith.select %42, %52, %51 : vector<16x1xi1>, vector<16x1xf32>
    %c3_i32 = arith.constant 3 : i32
    %54 = vector.broadcast %c3_i32 : i32 to vector<16x1xi32>
    %55 = arith.cmpi slt, %1, %54 : vector<16x1xi32>
    %c3_i32_22 = arith.constant 3 : i32
    %56 = vector.broadcast %c3_i32_22 : i32 to vector<16x1xi32>
    %57 = arith.cmpi eq, %1, %56 : vector<16x1xi32>
    %c4_i32 = arith.constant 4 : i32
    %58 = vector.broadcast %c4_i32 : i32 to vector<16x1xi32>
    %59 = arith.cmpi sge, %1, %58 : vector<16x1xi32>
    %c6_i32_23 = arith.constant 6 : i32
    %60 = vector.broadcast %c6_i32_23 : i32 to vector<16x1xi32>
    %61 = arith.cmpi slt, %1, %60 : vector<16x1xi32>
    %62 = arith.andi %59, %61 : vector<16x1xi1>
    %c6_i32_24 = arith.constant 6 : i32
    %63 = vector.broadcast %c6_i32_24 : i32 to vector<16x1xi32>
    %64 = arith.cmpi sge, %1, %63 : vector<16x1xi32>
    %c9_i32 = arith.constant 9 : i32
    %65 = vector.broadcast %c9_i32 : i32 to vector<16x1xi32>
    %66 = arith.cmpi slt, %1, %65 : vector<16x1xi32>
    %67 = arith.andi %64, %66 : vector<16x1xi1>
    %cst_25 = arith.constant 0xFF800000 : f32
    %68 = vector.shape_cast %55 : vector<16x1xi1> to vector<16x1xi1>
    %69 = vector.broadcast %68 : vector<16x1xi1> to vector<16x256xi1>
    %70 = vector.broadcast %cst_25 : f32 to vector<16x256xf32>
    %71 = arith.select %69, %0, %70 : vector<16x256xi1>, vector<16x256xf32>
    %72 = vector.shape_cast %71 : vector<16x256xf32> to vector<1x16x256xf32>
    %cst_26 = arith.constant dense<0xFF800000> : vector<1xf32>
    %73 = vector.multi_reduction <maximumf>, %72, %cst_26 [1, 2] : vector<1x16x256xf32> to vector<1xf32>
    %74 = vector.shape_cast %73 : vector<1xf32> to vector<1x1x1xf32>
    %75 = vector.extract %74[0, 0, 0] : f32 from vector<1x1x1xf32>
    %cst_27 = arith.constant 1.000000e+00 : f32
    %76 = arith.cmpf ogt, %75, %cst_27 : f32
    %cst_28 = arith.constant 0.00392156886 : f32
    %cst_29 = arith.constant 1.000000e+00 : f32
    %77 = arith.select %76, %cst_28, %cst_29 : f32
    %cst_30 = arith.constant 0xFF800000 : f32
    %78 = vector.shape_cast %57 : vector<16x1xi1> to vector<16x1xi1>
    %79 = vector.broadcast %78 : vector<16x1xi1> to vector<16x256xi1>
    %80 = vector.broadcast %cst_30 : f32 to vector<16x256xf32>
    %81 = arith.select %79, %0, %80 : vector<16x256xi1>, vector<16x256xf32>
    %82 = vector.shape_cast %81 : vector<16x256xf32> to vector<1x16x256xf32>
    %cst_31 = arith.constant dense<0xFF800000> : vector<1xf32>
    %83 = vector.multi_reduction <maximumf>, %82, %cst_31 [1, 2] : vector<1x16x256xf32> to vector<1xf32>
    %84 = vector.shape_cast %83 : vector<1xf32> to vector<1x1x1xf32>
    %85 = vector.extract %84[0, 0, 0] : f32 from vector<1x1x1xf32>
    %cst_32 = arith.constant 1.000000e+00 : f32
    %86 = arith.cmpf ogt, %85, %cst_32 : f32
    %cst_33 = arith.constant 0.00392156886 : f32
    %cst_34 = arith.constant 1.000000e+00 : f32
    %87 = arith.select %86, %cst_33, %cst_34 : f32
    %88 = vector.extract_strided_slice %0 {offsets = [3, 0], sizes = [1, 256], strides = [1, 1]} : vector<16x256xf32> to vector<1x256xf32>
    %89 = vector.broadcast %87 : f32 to vector<1x256xf32>
    %90 = arith.mulf %88, %89 : vector<1x256xf32>
    %91 = vector.broadcast %77 : f32 to vector<16x1xf32>
    %92 = arith.mulf %91, %14 : vector<16x1xf32>
    %cst_35 = arith.constant 0.000000e+00 : f32
    %93 = vector.broadcast %cst_35 : f32 to vector<16x1xf32>
    %94 = arith.select %67, %40, %93 : vector<16x1xi1>, vector<16x1xf32>
    %cst_36 = arith.constant 1.280000e+02 : f32
    %95 = vector.broadcast %cst_36 : f32 to vector<16x1xf32>
    %96 = arith.select %62, %95, %94 : vector<16x1xi1>, vector<16x1xf32>
    %97 = vector.broadcast %87 : f32 to vector<16x1xf32>
    %98 = arith.select %57, %97, %96 : vector<16x1xi1>, vector<16x1xf32>
    %99 = arith.select %55, %92, %98 : vector<16x1xi1>, vector<16x1xf32>
    %cst_37 = arith.constant 0.000000e+00 : f32
    %100 = vector.broadcast %cst_37 : f32 to vector<16x1xf32>
    %101 = arith.subf %100, %27 : vector<16x1xf32>
    %102 = arith.mulf %101, %14 : vector<16x1xf32>
    %cst_38 = arith.constant 1.360000e+02 : f32
    %cst_39 = arith.constant 0.000000e+00 : f32
    %103 = vector.broadcast %cst_38 : f32 to vector<16x1xf32>
    %104 = vector.broadcast %cst_39 : f32 to vector<16x1xf32>
    %105 = arith.select %62, %103, %104 : vector<16x1xi1>, vector<16x1xf32>
    %106 = arith.select %55, %102, %105 : vector<16x1xi1>, vector<16x1xf32>
    %cst_40 = arith.constant 0.000000e+00 : f32
    %107 = vector.broadcast %cst_40 : f32 to vector<16x1xf32>
    %108 = arith.select %67, %53, %107 : vector<16x1xi1>, vector<16x1xf32>
    %109 = arith.ori %62, %67 : vector<16x1xi1>
    %cst_41 = arith.constant 1.000000e+00 : f32
    %110 = vector.shape_cast %109 : vector<16x1xi1> to vector<16x1xi1>
    %111 = vector.broadcast %110 : vector<16x1xi1> to vector<16x256xi1>
    %112 = vector.shape_cast %90 : vector<1x256xf32> to vector<1x256xf32>
    %113 = vector.broadcast %112 : vector<1x256xf32> to vector<16x256xf32>
    %114 = vector.broadcast %cst_41 : f32 to vector<16x256xf32>
    %115 = arith.select %111, %113, %114 : vector<16x256xi1>, vector<16x256xf32>
    %116 = vector.broadcast %99 : vector<16x1xf32> to vector<16x256xf32>
    %117 = arith.mulf %0, %116 : vector<16x256xf32>
    %118 = vector.broadcast %106 : vector<16x1xf32> to vector<16x256xf32>
    %119 = arith.addf %117, %118 : vector<16x256xf32>
    %120 = arith.mulf %119, %115 : vector<16x256xf32>
    %121 = vector.broadcast %108 : vector<16x1xf32> to vector<16x256xf32>
    %122 = arith.addf %120, %121 : vector<16x256xf32>
    %cst_42 = arith.constant 0.000000e+00 : f32
    %123 = vector.broadcast %cst_42 : f32 to vector<16x256xf32>
    %124 = arith.maximumf %122, %123 : vector<16x256xf32>
    %125 = vector.shape_cast %67 : vector<16x1xi1> to vector<16x1xi1>
    %126 = vector.broadcast %125 : vector<16x1xi1> to vector<16x256xi1>
    %127 = arith.select %126, %124, %122 : vector<16x256xi1>, vector<16x256xf32>
    %c0_43 = arith.constant 0 : index
    %c0_44 = arith.constant 0 : index
    %128 = vector.load %arg1[%c0_43, %c0_44] : memref<16x256xf32, #tpu.memory_space<vmem>>, vector<16x256xf32>
    tpu.vector_store %arg1[%c0_43, %c0_44], %127 {strides = array<i32>} : memref<16x256xf32, #tpu.memory_space<vmem>>, vector<16x256xf32>,
    %129 = vector.extract_strided_slice %127 {offsets = [4, 0], sizes = [1, 256], strides = [1, 1]} : vector<16x256xf32> to vector<1x256xf32>
    %130 = vector.extract_strided_slice %127 {offsets = [5, 0], sizes = [1, 256], strides = [1, 1]} : vector<16x256xf32> to vector<1x256xf32>
    %cst_45 = arith.constant 0.000000e+00 : f32
    %131 = vector.broadcast %cst_45 : f32 to vector<1x256xf32>
    %132 = arith.cmpf ogt, %90, %131 : vector<1x256xf32>
    %133 = tpu.iota {dimensions = array<i32: 0>} : vector<16x256xi32>
    %134 = tpu.iota {dimensions = array<i32: 1>} : vector<16x256xi32>
    %c4_i32_46 = arith.constant 4 : i32
    %135 = vector.broadcast %c4_i32_46 : i32 to vector<16x256xi32>
    %136 = arith.shrsi %134, %135 : vector<16x256xi32>
    %c15_i32 = arith.constant 15 : i32
    %137 = vector.broadcast %c15_i32 : i32 to vector<16x256xi32>
    %138 = arith.andi %134, %137 : vector<16x256xi32>
    %139 = arith.sitofp %133 : vector<16x256xi32> to vector<16x256xf32>
    %cst_47 = arith.constant 0.000000e+00 : f32
    %140 = vector.broadcast %cst_47 : f32 to vector<16x256xf32>
    %141 = arith.subf %139, %140 : vector<16x256xf32>
    %cst_48 = arith.constant 8.000000e+00 : f32
    %142 = vector.broadcast %cst_48 : f32 to vector<16x256xf32>
    %143 = arith.mulf %142, %141 : vector<16x256xf32>
    %cst_49 = arith.constant 1.360000e+02 : f32
    %144 = vector.broadcast %cst_49 : f32 to vector<16x256xf32>
    %145 = arith.addf %144, %143 : vector<16x256xf32>
    %146 = vector.broadcast %129 : vector<1x256xf32> to vector<16x256xf32>
    %147 = arith.cmpf oge, %145, %146 : vector<16x256xf32>
    %148 = vector.broadcast %130 : vector<1x256xf32> to vector<16x256xf32>
    %149 = arith.cmpf ole, %145, %148 : vector<16x256xf32>
    %150 = arith.andi %147, %149 : vector<16x256xi1>
    %151 = vector.broadcast %132 : vector<1x256xi1> to vector<16x256xi1>
    %152 = arith.andi %150, %151 : vector<16x256xi1>
    %cst_50 = arith.constant 1.000000e+00 : f32
    %cst_51 = arith.constant -1.000000e+00 : f32
    %153 = vector.broadcast %cst_50 : f32 to vector<16x256xf32>
    %154 = vector.broadcast %cst_51 : f32 to vector<16x256xf32>
    %155 = arith.select %152, %153, %154 : vector<16x256xi1>, vector<16x256xf32>
    %cst_52 = arith.constant 3.000000e+00 : f32
    %156 = vector.broadcast %cst_52 : f32 to vector<16x256xf32>
    %157 = arith.mulf %156, %155 : vector<16x256xf32>
    %c1_i32_53 = arith.constant 1 : i32
    %158 = vector.broadcast %c1_i32_53 : i32 to vector<16x256xi32>
    %159 = arith.cmpi sge, %133, %158 : vector<16x256xi32>
    %cst_54 = arith.constant 1.000000e+00 : f32
    %160 = vector.broadcast %cst_54 : f32 to vector<16x256xf32>
    %161 = arith.subf %139, %160 : vector<16x256xf32>
    %cst_55 = arith.constant 8.000000e+00 : f32
    %162 = vector.broadcast %cst_55 : f32 to vector<16x256xf32>
    %163 = arith.mulf %162, %161 : vector<16x256xf32>
    %cst_56 = arith.constant 1.360000e+02 : f32
    %164 = vector.broadcast %cst_56 : f32 to vector<16x256xf32>
    %165 = arith.addf %164, %163 : vector<16x256xf32>
    %166 = vector.broadcast %129 : vector<1x256xf32> to vector<16x256xf32>
    %167 = arith.cmpf oge, %165, %166 : vector<16x256xf32>
    %168 = vector.broadcast %130 : vector<1x256xf32> to vector<16x256xf32>
    %169 = arith.cmpf ole, %165, %168 : vector<16x256xf32>
    %170 = arith.andi %167, %169 : vector<16x256xi1>
    %171 = vector.broadcast %132 : vector<1x256xi1> to vector<16x256xi1>
    %172 = arith.andi %170, %171 : vector<16x256xi1>
    %cst_57 = arith.constant 1.000000e+00 : f32
    %cst_58 = arith.constant -1.000000e+00 : f32
    %173 = vector.broadcast %cst_57 : f32 to vector<16x256xf32>
    %174 = vector.broadcast %cst_58 : f32 to vector<16x256xf32>
    %175 = arith.select %172, %173, %174 : vector<16x256xi1>, vector<16x256xf32>
    %cst_59 = arith.constant 0.000000e+00 : f32
    %176 = vector.broadcast %cst_59 : f32 to vector<16x256xf32>
    %177 = arith.select %159, %175, %176 : vector<16x256xi1>, vector<16x256xf32>
    %cst_60 = arith.constant 2.000000e+00 : f32
    %178 = vector.broadcast %cst_60 : f32 to vector<16x256xf32>
    %179 = arith.mulf %178, %177 : vector<16x256xf32>
    %180 = arith.addf %157, %179 : vector<16x256xf32>
    %c14_i32 = arith.constant 14 : i32
    %181 = vector.broadcast %c14_i32 : i32 to vector<16x256xi32>
    %182 = arith.cmpi sle, %133, %181 : vector<16x256xi32>
    %cst_61 = arith.constant -1.000000e+00 : f32
    %183 = vector.broadcast %cst_61 : f32 to vector<16x256xf32>
    %184 = arith.subf %139, %183 : vector<16x256xf32>
    %cst_62 = arith.constant 8.000000e+00 : f32
    %185 = vector.broadcast %cst_62 : f32 to vector<16x256xf32>
    %186 = arith.mulf %185, %184 : vector<16x256xf32>
    %cst_63 = arith.constant 1.360000e+02 : f32
    %187 = vector.broadcast %cst_63 : f32 to vector<16x256xf32>
    %188 = arith.addf %187, %186 : vector<16x256xf32>
    %189 = vector.broadcast %129 : vector<1x256xf32> to vector<16x256xf32>
    %190 = arith.cmpf oge, %188, %189 : vector<16x256xf32>
    %191 = vector.broadcast %130 : vector<1x256xf32> to vector<16x256xf32>
    %192 = arith.cmpf ole, %188, %191 : vector<16x256xf32>
    %193 = arith.andi %190, %192 : vector<16x256xi1>
    %194 = vector.broadcast %132 : vector<1x256xi1> to vector<16x256xi1>
    %195 = arith.andi %193, %194 : vector<16x256xi1>
    %cst_64 = arith.constant 1.000000e+00 : f32
    %cst_65 = arith.constant -1.000000e+00 : f32
    %196 = vector.broadcast %cst_64 : f32 to vector<16x256xf32>
    %197 = vector.broadcast %cst_65 : f32 to vector<16x256xf32>
    %198 = arith.select %195, %196, %197 : vector<16x256xi1>, vector<16x256xf32>
    %cst_66 = arith.constant 0.000000e+00 : f32
    %199 = vector.broadcast %cst_66 : f32 to vector<16x256xf32>
    %200 = arith.select %182, %198, %199 : vector<16x256xi1>, vector<16x256xf32>
    %cst_67 = arith.constant 2.000000e+00 : f32
    %201 = vector.broadcast %cst_67 : f32 to vector<16x256xf32>
    %202 = arith.mulf %201, %200 : vector<16x256xf32>
    %203 = arith.addf %180, %202 : vector<16x256xf32>
    %c2_i32_68 = arith.constant 2 : i32
    %204 = vector.broadcast %c2_i32_68 : i32 to vector<16x256xi32>
    %205 = arith.cmpi sge, %133, %204 : vector<16x256xi32>
    %cst_69 = arith.constant 2.000000e+00 : f32
    %206 = vector.broadcast %cst_69 : f32 to vector<16x256xf32>
    %207 = arith.subf %139, %206 : vector<16x256xf32>
    %cst_70 = arith.constant 8.000000e+00 : f32
    %208 = vector.broadcast %cst_70 : f32 to vector<16x256xf32>
    %209 = arith.mulf %208, %207 : vector<16x256xf32>
    %cst_71 = arith.constant 1.360000e+02 : f32
    %210 = vector.broadcast %cst_71 : f32 to vector<16x256xf32>
    %211 = arith.addf %210, %209 : vector<16x256xf32>
    %212 = vector.broadcast %129 : vector<1x256xf32> to vector<16x256xf32>
    %213 = arith.cmpf oge, %211, %212 : vector<16x256xf32>
    %214 = vector.broadcast %130 : vector<1x256xf32> to vector<16x256xf32>
    %215 = arith.cmpf ole, %211, %214 : vector<16x256xf32>
    %216 = arith.andi %213, %215 : vector<16x256xi1>
    %217 = vector.broadcast %132 : vector<1x256xi1> to vector<16x256xi1>
    %218 = arith.andi %216, %217 : vector<16x256xi1>
    %cst_72 = arith.constant 1.000000e+00 : f32
    %cst_73 = arith.constant -1.000000e+00 : f32
    %219 = vector.broadcast %cst_72 : f32 to vector<16x256xf32>
    %220 = vector.broadcast %cst_73 : f32 to vector<16x256xf32>
    %221 = arith.select %218, %219, %220 : vector<16x256xi1>, vector<16x256xf32>
    %cst_74 = arith.constant 0.000000e+00 : f32
    %222 = vector.broadcast %cst_74 : f32 to vector<16x256xf32>
    %223 = arith.select %205, %221, %222 : vector<16x256xi1>, vector<16x256xf32>
    %224 = arith.addf %203, %223 : vector<16x256xf32>
    %c13_i32 = arith.constant 13 : i32
    %225 = vector.broadcast %c13_i32 : i32 to vector<16x256xi32>
    %226 = arith.cmpi sle, %133, %225 : vector<16x256xi32>
    %cst_75 = arith.constant -2.000000e+00 : f32
    %227 = vector.broadcast %cst_75 : f32 to vector<16x256xf32>
    %228 = arith.subf %139, %227 : vector<16x256xf32>
    %cst_76 = arith.constant 8.000000e+00 : f32
    %229 = vector.broadcast %cst_76 : f32 to vector<16x256xf32>
    %230 = arith.mulf %229, %228 : vector<16x256xf32>
    %cst_77 = arith.constant 1.360000e+02 : f32
    %231 = vector.broadcast %cst_77 : f32 to vector<16x256xf32>
    %232 = arith.addf %231, %230 : vector<16x256xf32>
    %233 = vector.broadcast %129 : vector<1x256xf32> to vector<16x256xf32>
    %234 = arith.cmpf oge, %232, %233 : vector<16x256xf32>
    %235 = vector.broadcast %130 : vector<1x256xf32> to vector<16x256xf32>
    %236 = arith.cmpf ole, %232, %235 : vector<16x256xf32>
    %237 = arith.andi %234, %236 : vector<16x256xi1>
    %238 = vector.broadcast %132 : vector<1x256xi1> to vector<16x256xi1>
    %239 = arith.andi %237, %238 : vector<16x256xi1>
    %cst_78 = arith.constant 1.000000e+00 : f32
    %cst_79 = arith.constant -1.000000e+00 : f32
    %240 = vector.broadcast %cst_78 : f32 to vector<16x256xf32>
    %241 = vector.broadcast %cst_79 : f32 to vector<16x256xf32>
    %242 = arith.select %239, %240, %241 : vector<16x256xi1>, vector<16x256xf32>
    %cst_80 = arith.constant 0.000000e+00 : f32
    %243 = vector.broadcast %cst_80 : f32 to vector<16x256xf32>
    %244 = arith.select %226, %242, %243 : vector<16x256xi1>, vector<16x256xf32>
    %245 = arith.addf %224, %244 : vector<16x256xf32>
    %cst_81 = arith.constant 3.000000e+00 : f32
    %246 = vector.broadcast %cst_81 : f32 to vector<16x256xf32>
    %247 = arith.mulf %246, %245 : vector<16x256xf32>
    %c16_i32 = arith.constant 16 : i32
    %248 = tpu.dynamic_rotate %245 by %c16_i32 dim 1 : vector<16x256xf32>, i32 -> vector<16x256xf32>
    %c1_i32_82 = arith.constant 1 : i32
    %249 = vector.broadcast %c1_i32_82 : i32 to vector<16x256xi32>
    %250 = arith.cmpi sge, %136, %249 : vector<16x256xi32>
    %cst_83 = arith.constant 0.000000e+00 : f32
    %251 = vector.broadcast %cst_83 : f32 to vector<16x256xf32>
    %252 = arith.select %250, %248, %251 : vector<16x256xi1>, vector<16x256xf32>
    %c240_i32 = arith.constant 240 : i32
    %253 = tpu.dynamic_rotate %245 by %c240_i32 dim 1 : vector<16x256xf32>, i32 -> vector<16x256xf32>
    %c14_i32_84 = arith.constant 14 : i32
    %254 = vector.broadcast %c14_i32_84 : i32 to vector<16x256xi32>
    %255 = arith.cmpi sle, %136, %254 : vector<16x256xi32>
    %cst_85 = arith.constant 0.000000e+00 : f32
    %256 = vector.broadcast %cst_85 : f32 to vector<16x256xf32>
    %257 = arith.select %255, %253, %256 : vector<16x256xi1>, vector<16x256xf32>
    %258 = arith.addf %252, %257 : vector<16x256xf32>
    %cst_86 = arith.constant 2.000000e+00 : f32
    %259 = vector.broadcast %cst_86 : f32 to vector<16x256xf32>
    %260 = arith.mulf %259, %258 : vector<16x256xf32>
    %261 = arith.addf %247, %260 : vector<16x256xf32>
    %c32_i32 = arith.constant 32 : i32
    %262 = tpu.dynamic_rotate %245 by %c32_i32 dim 1 : vector<16x256xf32>, i32 -> vector<16x256xf32>
    %c2_i32_87 = arith.constant 2 : i32
    %263 = vector.broadcast %c2_i32_87 : i32 to vector<16x256xi32>
    %264 = arith.cmpi sge, %136, %263 : vector<16x256xi32>
    %cst_88 = arith.constant 0.000000e+00 : f32
    %265 = vector.broadcast %cst_88 : f32 to vector<16x256xf32>
    %266 = arith.select %264, %262, %265 : vector<16x256xi1>, vector<16x256xf32>
    %267 = arith.addf %261, %266 : vector<16x256xf32>
    %c224_i32 = arith.constant 224 : i32
    %268 = tpu.dynamic_rotate %245 by %c224_i32 dim 1 : vector<16x256xf32>, i32 -> vector<16x256xf32>
    %c13_i32_89 = arith.constant 13 : i32
    %269 = vector.broadcast %c13_i32_89 : i32 to vector<16x256xi32>
    %270 = arith.cmpi sle, %136, %269 : vector<16x256xi32>
    %cst_90 = arith.constant 0.000000e+00 : f32
    %271 = vector.broadcast %cst_90 : f32 to vector<16x256xf32>
    %272 = arith.select %270, %268, %271 : vector<16x256xi1>, vector<16x256xf32>
    %273 = arith.addf %267, %272 : vector<16x256xf32>
    %cst_91 = arith.constant 3.000000e+00 : f32
    %274 = vector.broadcast %cst_91 : f32 to vector<16x256xf32>
    %275 = arith.mulf %274, %273 : vector<16x256xf32>
    %c1_i32_92 = arith.constant 1 : i32
    %276 = tpu.dynamic_rotate %273 by %c1_i32_92 dim 1 : vector<16x256xf32>, i32 -> vector<16x256xf32>
    %c1_i32_93 = arith.constant 1 : i32
    %277 = vector.broadcast %c1_i32_93 : i32 to vector<16x256xi32>
    %278 = arith.cmpi sge, %138, %277 : vector<16x256xi32>
    %cst_94 = arith.constant 0.000000e+00 : f32
    %279 = vector.broadcast %cst_94 : f32 to vector<16x256xf32>
    %280 = arith.select %278, %276, %279 : vector<16x256xi1>, vector<16x256xf32>
    %c255_i32 = arith.constant 255 : i32
    %281 = tpu.dynamic_rotate %273 by %c255_i32 dim 1 : vector<16x256xf32>, i32 -> vector<16x256xf32>
    %c14_i32_95 = arith.constant 14 : i32
    %282 = vector.broadcast %c14_i32_95 : i32 to vector<16x256xi32>
    %283 = arith.cmpi sle, %138, %282 : vector<16x256xi32>
    %cst_96 = arith.constant 0.000000e+00 : f32
    %284 = vector.broadcast %cst_96 : f32 to vector<16x256xf32>
    %285 = arith.select %283, %281, %284 : vector<16x256xi1>, vector<16x256xf32>
    %286 = arith.addf %280, %285 : vector<16x256xf32>
    %cst_97 = arith.constant 2.000000e+00 : f32
    %287 = vector.broadcast %cst_97 : f32 to vector<16x256xf32>
    %288 = arith.mulf %287, %286 : vector<16x256xf32>
    %289 = arith.addf %275, %288 : vector<16x256xf32>
    %c2_i32_98 = arith.constant 2 : i32
    %290 = tpu.dynamic_rotate %273 by %c2_i32_98 dim 1 : vector<16x256xf32>, i32 -> vector<16x256xf32>
    %c2_i32_99 = arith.constant 2 : i32
    %291 = vector.broadcast %c2_i32_99 : i32 to vector<16x256xi32>
    %292 = arith.cmpi sge, %138, %291 : vector<16x256xi32>
    %cst_100 = arith.constant 0.000000e+00 : f32
    %293 = vector.broadcast %cst_100 : f32 to vector<16x256xf32>
    %294 = arith.select %292, %290, %293 : vector<16x256xi1>, vector<16x256xf32>
    %295 = arith.addf %289, %294 : vector<16x256xf32>
    %c254_i32 = arith.constant 254 : i32
    %296 = tpu.dynamic_rotate %273 by %c254_i32 dim 1 : vector<16x256xf32>, i32 -> vector<16x256xf32>
    %c13_i32_101 = arith.constant 13 : i32
    %297 = vector.broadcast %c13_i32_101 : i32 to vector<16x256xi32>
    %298 = arith.cmpi sle, %138, %297 : vector<16x256xi32>
    %cst_102 = arith.constant 0.000000e+00 : f32
    %299 = vector.broadcast %cst_102 : f32 to vector<16x256xf32>
    %300 = arith.select %298, %296, %299 : vector<16x256xi1>, vector<16x256xf32>
    %301 = arith.addf %295, %300 : vector<16x256xf32>
    %cst_103 = arith.constant 0.00137174211 : f32
    %302 = vector.broadcast %cst_103 : f32 to vector<16x256xf32>
    %303 = arith.mulf %301, %302 : vector<16x256xf32>
    %c0_104 = arith.constant 0 : index
    %c0_105 = arith.constant 0 : index
    %304 = vector.load %arg2[%c0_104, %c0_105] : memref<16x256xf32, #tpu.memory_space<vmem>>, vector<16x256xf32>
    tpu.vector_store %arg2[%c0_104, %c0_105], %303 {strides = array<i32>} : memref<16x256xf32, #tpu.memory_space<vmem>>, vector<16x256xf32>,
    return
  }
}

</mosaic_0001>

<bundles_post_ra>
// kernel: human_recon_forward.1
= control target key start
LH: loop header
LB: loop body
LE: loop exit
PB: predicated region body
PF: predicated region fallthrough
CT: control target
= control target key end

     0   :  { %v14_v0 = vlaneseq  ;;  %v645_v24 = vmov 0.0   ;;  %s649_s28 = smov 16   ;;  %s650_s29 = smov 112   ;;  %s1306_s0 = inlined_call_operand.vmem [shape: f32[16,256], index: 0, kind: input, shape index: {}]   ;;  %s1307_s1 = inlined_call_operand.vmem [shape: f32[16,256], index: 1, kind: output, shape index: {0}]   ;;  %s1308_s2 = inlined_call_operand.vmem [shape: f32[16,256], index: 2, kind: output, shape index: {1}]  }
   0x1   :  { %v674_v1 = vld [vmem:[%s1306_s0] sm:$0xff]  ;;  %v679_v2 = vld [vmem:[%s1306_s0 + $0x8] sm:$0xff]  ;;  %v12_v42 = vld [vmem:[%s1306_s0 + $0x10] sm:$0xff]  ;;  %s651_s30 = smov 96   ;;  %s652_s3 = smov 1  }
   0x2   :  { %v682_v3 = vshrl.u32 %v14_v0, 7  ;;  %v13_v43 = vld [vmem:[%s1306_s0 + $0x18] sm:$0xff]  ;;  %s653_s4 = smov 127   ;;  %s654_s5 = smov 2  }
   0x3   :  { %s655_s6 = smov 126  }
   0x4   :  { %vm53_vm0 = vcmp.lt.s32.totalorder %v682_v3, 3  ;;  %vm55_vm1 = vcmp.eq.s32.totalorder %v682_v3, 3  ;;  %vm21_vm2 = vcmp.eq.s32.totalorder %v682_v3, 2  ;;  %vm37_vm3 = vcmp.eq.s32.totalorder %v682_v3, 7 }
   0x5   :  { %v73_v4 = vsel %vm53_vm0, %v674_v1, -inf  ;;  %v74_v5 = vsel %vm53_vm0, %v679_v2, -inf  ;;  %v95_v6 = vsel %vm55_vm1, %v674_v1, -inf  ;;  %v96_v7 = vsel %vm55_vm1, %v679_v2, -inf }
   0x6   :  { %v77_v8 = vmax.f32 %v73_v4, %v74_v5  ;;  %v99_v9 = vmax.f32 %v95_v6, %v96_v7  ;;  %v29_v25 = vsel %vm21_vm2, 0.406, %v645_v24  ;;  %vm19_vm4 = vcmp.eq.s32.totalorder %v682_v3, 1 }
   0x7   :  { %v31_v26 = vsel %vm19_vm4, 0.456, %v29_v25  ;;  %v702_v27 = vadd.s32 8, %v682_v3  ;;  %vm35_vm5 = vcmp.eq.s32.totalorder %v682_v3, 6  ;;  %v43_v28 = vsel %vm37_vm3, 0.224, %v645_v24 }
   0x8   :  { %80 = vmax.xlane.f32.xlu0 %v77_v8  ;;  %vm17_vm6 = vcmp.eq.s32.totalorder %v682_v3, 0  ;;  %v23_v29 = vsel %vm21_vm2, 4.4444447, %v645_v24  ;;  %v45_v31 = vsel %vm35_vm5, 0.229, %v43_v28  ;;  %vm57_vm7 = vcmp.ge.s32.totalorder %v682_v3, 4 }
   0x9   :  { %v33_v30 = vsel %vm17_vm6, 0.485, %v31_v26  ;;  %vm59_vm8 = vcmp.lt.s32.totalorder %v682_v3, 6  ;;  %vm63_vm9 = vcmp.ge.s32.totalorder %v682_v3, 6  ;;  %vm40_vm10 = vcmp.eq.s32.totalorder %v702_v27, 8 }
   0xa   :  { %v25_v32 = vsel %vm19_vm4, 4.464286, %v23_v29  ;;  %v127_v33 = vsub.f32 0.0, %v33_v30  ;;  %vm716_vm11 = vmand %vm57_vm7, %vm59_vm8  ;;  %v119_v35 = vsel %vm63_vm9, %v45_v31, 0.0  ;;  %v42_v36 = vsel %vm40_vm10, 0.225, %v645_v24 }
   0xb   :  { %vm66_vm12 = vcmp.lt.s32.totalorder %v702_v27, 9  ;;  %v27_v37 = vsel %vm17_vm6, 4.366812, %v25_v32  ;;  %v49_v39 = vsel %vm37_vm3, 0.456, %v645_v24  ;;  %v121_v41 = vsel %vm716_vm11, 128.0, %v119_v35  ;;  %vm763_vm13 = vmor %vm716_vm11, %vm63_vm9 }
   0xc   :  { %102 = vmax.xlane.f32.xlu0 %v99_v9  ;;  %v129_v40 = vmul.f32 %v127_v33, %v27_v37  ;;  %v120_v44 = vsel %vm66_vm12, %v42_v36, 0.0  ;;  %v131_v45 = vsel %vm716_vm11, 136.0, %v645_v24  ;;  %v742_v46 = vsub.s32 3, %v682_v3 }
   0xd   :  { %v51_v48 = vsel %vm35_vm5, 0.485, %v49_v39  ;;  %v197_v50 = vcvt.s32.f32 %v702_v27  ;;  %v48_v51 = vsel %vm40_vm10, 0.406, %v645_v24  ;;  %v157_v58 = vmul.f32 %v120_v44, %v12_v42 }
   0xe   :  { %v133_v56 = vsel %vm53_vm0, %v129_v40, %v131_v45  ;;  %v158_v59 = vmul.f32 %v120_v44, %v13_v43  ;;  %v135_v4 = vsel %vm63_vm9, %v51_v48, 0.0  ;;  %v136_v5 = vsel %vm66_vm12, %v48_v51, 0.0 }
   0xf   :  { %v623_v6 = vadd.f32 -1.0, %v197_v50  ;;  %v646_v28 = vmov 0   ;;  %v629_v32 = vadd.f32 2.0, %v197_v50  ;;  %v1085_v48 = vand.u32 127, %v14_v0 }
  0x11   :  { %v375_v45 = vmul.f32 8.0, %v629_v32 }
  0x95   :  { %v81_v10 = vpop.xlane.xlu0 %80 }
  0x96   :  { %v82_v11 = vrot.slane %v81_v10, 4 }
  0x98   :  { %v83_v12 = vmax.f32 %v81_v10, %v82_v11 }
  0x99   :  { %v103_v13 = vpop.xlane.xlu0 %102 }
  0x9a   :  { %v84_v14 = vrot.slane %v83_v12, 2  ;;  %v104_v15 = vrot.slane %v103_v13, 4 }
  0x9c   :  { %v105_v16 = vmax.f32 %v103_v13, %v104_v15  ;;  %v85_v17 = vmax.f32 %v83_v12, %v84_v14  ;;  %v625_v13 = vadd.f32 1.0, %v197_v50  ;;  %v627_v14 = vadd.f32 -2.0, %v197_v50 }
  0x9e   :  { %v106_v18 = vrot.slane %v105_v16, 2  ;;  %v86_v19 = vrot.slane %v85_v17, 1  ;;  %v299_v30 = vmul.f32 8.0, %v625_v13  ;;  %v339_v31 = vmul.f32 8.0, %v627_v14 }
  0xa0   :  { %v87_v20 = vmax.f32 %v85_v17, %v86_v19  ;;  %v107_v21 = vmax.f32 %v105_v16, %v106_v18  ;;  %v204_v19 = vsub.s32 4, %v682_v3  ;;  %v814_v44 = vadd.f32 136.0, %v299_v30 }
  0xa2   :  { %630 = vpush %v87_v20  ;;  %v108_v22 = vrot.slane %v107_v21, 1  ;;  %v216_v20 = vsub.s32 5, %v682_v3 }
  0xa4   :  { %v109_v23 = vmax.f32 %v107_v21, %v108_v22  ;;  %v199_v21 = vmul.f32 8.0, %v197_v50  ;;  %v259_v22 = vmul.f32 8.0, %v623_v6 }
  0xa6   :  { %632 = vpush %v109_v23 }
  0xd3   :  { %s631_s13 = spop %630 }
  0xd4   :  { %p89_p0 = scmp.gt.f32.partialorder %s631_s13, 1.0 }
  0xd6   :  { %s90_s14 = scalar_select %p89_p0, 0.003921569, 1.0 }
  0xd7   :  { %s633_s15 = spop %632 }
  0xd8   :  { %p111_p1 = scmp.gt.f32.partialorder %s633_s15, 1.0  ;;  %v116_v38 = vstv %s90_s14 }
  0xd9   :  { %v117_v47 = vmul.f32 %v116_v38, %v27_v37  ;;  %v201_v37 = vadd.f32 136.0, %v199_v21  ;;  %v797_v38 = vadd.f32 136.0, %v259_v22 }
  0xda   :  { %s112_s16 = scalar_select %p111_p1, 0.003921569, 1.0 }
  0xdc   :  { %v113_v49 = vstv %s112_s16 }
  0xdd   :  { %v114_v52 = vmul.f32 %v113_v49, %v674_v1  ;;  %v751_v53 = vmul.f32 %v113_v49, %v679_v2  ;;  %v123_v54 = vsel %vm55_vm1, %v113_v49, %v121_v41  ;;  %v835_v49 = vadd.f32 136.0, %v375_v45 }
  0xde   :  { %v125_v55 = vsel %vm53_vm0, %v117_v47, %v123_v54  ;;  %v817_v47 = vadd.f32 136.0, %v339_v31  ;;  %v196_v54 = vcvt.s32.f32 %v682_v3 }
  0xdf   :  { %v146_v60 = vrot.slane %v114_v52, %v742_v46  ;;  %v150_v61 = vrot.slane %v751_v53, %v742_v46  ;;  %v155_v62 = vmul.f32 %v125_v55, %v674_v1  ;;  %v156_v63 = vmul.f32 %v125_v55, %v679_v2 }
  0xe0   :  { %vm187_vm14 = vcmp.gt.f32.partialorder %v114_v52, 0.0  ;;  %vm188_vm15 = vcmp.gt.f32.partialorder %v751_v53, 0.0  ;;  %v647_v52 = vmov -1.0   ;;  %v624_v6 = vadd.f32 1.0, %v196_v54 }
  0xe1   :  { %v151_v7 = vsel %vm763_vm13, %v146_v60, 1.0  ;;  %v152_v8 = vsel %vm763_vm13, %v150_v61, 1.0  ;;  %v153_v9 = vsel %vm66_vm12, %v146_v60, 1.0  ;;  %v154_v1 = vsel %vm66_vm12, %v150_v61, 1.0 }
  0xe2   :  { %v159_v2 = vadd.f32 %v155_v62, %v133_v56  ;;  %v160_v10 = vadd.f32 %v156_v63, %v133_v56  ;;  %v165_v11 = vmul.f32 %v157_v58, %v153_v9  ;;  %v166_v12 = vmul.f32 %v158_v59, %v154_v1 }
  0xe3   :  { %v230_v29 = vsel %vm187_vm14, 1, %v646_v28  ;;  %v231_v51 = vsel %vm188_vm15, 1, %v646_v28  ;;  %vm295_vm13 = vcmp.le.s32.totalorder %v702_v27, 14  ;;  %v198_v59 = vmul.f32 8.0, %v196_v54 }
  0xe4   :  { %v163_v15 = vmul.f32 %v159_v2, %v151_v7  ;;  %v164_v16 = vmul.f32 %v160_v10, %v152_v8  ;;  %v169_v17 = vadd.f32 %v165_v11, %v136_v5  ;;  %v170_v18 = vadd.f32 %v166_v12, %v136_v5 }
  0xe5   :  { %v235_v41 = vrot.slane %v230_v29, %v742_v46  ;;  %v239_v60 = vrot.slane %v231_v51, %v742_v46  ;;  %v622_v63 = vadd.f32 -1.0, %v196_v54  ;;  %v884_v7 = vadd.f32 136.0, %v198_v59 }
  0xe6   :  { %v167_v23 = vadd.f32 %v163_v15, %v135_v4  ;;  %v168_v24 = vadd.f32 %v164_v16, %v135_v4  ;;  %v173_v25 = vmax.f32 %v169_v17, 0.0  ;;  %v174_v26 = vmax.f32 %v170_v18, 0.0 }
  0xe7   :  { %vm825_vm4 = vcmp.eq.s32.totalorder %v235_v41, 1  ;;  %v258_v2 = vmul.f32 8.0, %v622_v63  ;;  %v626_v11 = vadd.f32 -2.0, %v196_v54  ;;  %v298_v14 = vmul.f32 8.0, %v624_v6 }
  0xe8   :  { %v171_v33 = vmax.f32 %v167_v23, 0.0  ;;  %v172_v34 = vmax.f32 %v168_v24, 0.0  ;;  %v181_v35 = vsel %vm66_vm12, %v173_v25, %v169_v17  ;;  %v182_v36 = vsel %vm66_vm12, %v174_v26, %v170_v18 }
  0xe9   :  { %185 = vst [vmem:[%s1307_s1 + $0x10] sm:$0xff] %v181_v35  ;;  %186 = vst [vmem:[%s1307_s1 + $0x18] sm:$0xff] %v182_v36  ;;  %v628_v15 = vadd.f32 2.0, %v196_v54  ;;  %v338_v22 = vmul.f32 8.0, %v626_v11  ;;  %v944_v25 = vadd.f32 136.0, %v298_v14 }
  0xea   :  { %v179_v39 = vsel %vm63_vm9, %v171_v33, %v167_v23  ;;  %v180_v40 = vsel %vm63_vm9, %v172_v34, %v168_v24 }
  0xeb   :  { %183 = vst [vmem:[%s1307_s1] sm:$0xff] %v179_v39  ;;  %184 = vst [vmem:[%s1307_s1 + $0x8] sm:$0xff] %v180_v40  ;;  %v810_v42 = vrot.slane %v179_v39, %v204_v19  ;;  %v812_v43 = vrot.slane %v179_v39, %v216_v20  ;;  %v837_v50 = vrot.slane %v180_v40, %v204_v19  ;;  %s648_s1 = smov 32   ;;  %v374_v26 = vmul.f32 8.0, %v628_v15 }
  0xec   :  { %v841_v55 = vrot.slane %v180_v40, %v216_v20  ;;  %v921_v20 = vadd.f32 136.0, %v258_v2  ;;  %v968_v31 = vadd.f32 136.0, %v338_v22  ;;  %v1091_v2 = vshra.s32 %v1085_v48, 4 }
  0xed   :  { %vm212_vm0 = vcmp.ge.f32.partialorder %v201_v37, %v810_v42  ;;  %vm224_vm1 = vcmp.le.f32.partialorder %v201_v37, %v812_v43  ;;  %vm264_vm2 = vcmp.ge.f32.partialorder %v797_v38, %v810_v42  ;;  %vm268_vm3 = vcmp.le.f32.partialorder %v797_v38, %v812_v43 }
  0xee   :  { %vm228_vm5 = vmand %vm212_vm0, %vm224_vm1  ;;  %vm304_vm7 = vcmp.ge.f32.partialorder %v814_v44, %v810_v42  ;;  %vm308_vm8 = vcmp.le.f32.partialorder %v814_v44, %v812_v43  ;;  %vm344_vm11 = vcmp.ge.f32.partialorder %v817_v47, %v810_v42  ;;  %vm348_vm12 = vcmp.le.f32.partialorder %v817_v47, %v812_v43 }
  0xef   :  { %vm244_vm6 = vmand %vm228_vm5, %vm825_vm4  ;;  %vm380_vm0 = vcmp.ge.f32.partialorder %v835_v49, %v810_v42  ;;  %vm384_vm1 = vcmp.le.f32.partialorder %v835_v49, %v812_v43  ;;  %vm213_vm5 = vcmp.ge.f32.partialorder %v201_v37, %v837_v50  ;;  %v978_v35 = vadd.f32 136.0, %v374_v26 }
  0xf0   :  { %v248_v53 = vsel %vm244_vm6, 1.0, %v647_v52  ;;  %vm272_vm9 = vmand %vm264_vm2, %vm268_vm3  ;;  %vm225_vm6 = vcmp.le.f32.partialorder %v201_v37, %v841_v55 }
  0xf1   :  { %v252_v56 = vmul.f32 3.0, %v248_v53  ;;  %vm276_vm10 = vmand %vm272_vm9, %vm825_vm4 }
  0xf2   :  { %v280_v57 = vsel %vm276_vm10, 1.0, %v647_v52  ;;  %vm312_vm14 = vmand %vm304_vm7, %vm308_vm8  ;;  %vm371_vm8 = vcmp.le.s32.totalorder %v702_v27, 13  ;;  %vm265_vm10 = vcmp.ge.f32.partialorder %v797_v38, %v837_v50 }
  0xf3   :  { %v288_v58 = vmul.f32 2.0, %v280_v57  ;;  %vm316_vm15 = vmand %vm312_vm14, %vm825_vm4 }
  0xf4   :  { %v320_v61 = vsel %vm316_vm15, 1.0, %v647_v52  ;;  %vm865_vm2 = vmand %vm344_vm11, %vm348_vm12  ;;  %vm269_vm11 = vcmp.le.f32.partialorder %v797_v38, %v841_v55  ;;  %vm886_vm12 = vcmp.eq.s32.totalorder %v239_v60, 1 }
  0xf5   :  { %v292_v4 = vadd.f32 %v288_v58, %v252_v56  ;;  %v324_v5 = vsel %vm295_vm13, %v320_v61, 0.0  ;;  %vm356_vm3 = vmand %vm865_vm2, %vm825_vm4 }
  0xf6   :  { %v328_v46 = vmul.f32 2.0, %v324_v5  ;;  %vm388_vm7 = vmand %vm380_vm0, %vm384_vm1  ;;  %v360_v10 = vsel %vm356_vm3, 1.0, %v647_v52  ;;  %vm305_vm0 = vcmp.ge.f32.partialorder %v814_v44, %v837_v50  ;;  %vm309_vm1 = vcmp.le.f32.partialorder %v814_v44, %v841_v55 }
  0xf7   :  { %vm392_vm9 = vmand %vm388_vm7, %vm825_vm4  ;;  %vm345_vm3 = vcmp.ge.f32.partialorder %v817_v47, %v837_v50 }
  0xf8   :  { %v332_v9 = vadd.f32 %v328_v46, %v292_v4  ;;  %v396_v1 = vsel %vm392_vm9, 1.0, %v647_v52  ;;  %vm229_vm14 = vmand %vm213_vm5, %vm225_vm6  ;;  %vm349_vm6 = vcmp.le.f32.partialorder %v817_v47, %v841_v55 }
  0xf9   :  { %vm245_vm15 = vmand %vm229_vm14, %vm886_vm12  ;;  %v400_v16 = vsel %vm371_vm8, %v396_v1, 0.0 }
  0xfa   :  { %v368_v12 = vadd.f32 %v360_v10, %v332_v9  ;;  %v249_v13 = vsel %vm245_vm15, 1.0, %v647_v52  ;;  %vm273_vm5 = vmand %vm265_vm10, %vm269_vm11  ;;  %vm381_vm10 = vcmp.ge.f32.partialorder %v835_v49, %v837_v50  ;;  %vm385_vm11 = vcmp.le.f32.partialorder %v835_v49, %v841_v55 }
  0xfb   :  { %v253_v17 = vmul.f32 3.0, %v249_v13  ;;  %vm277_vm2 = vmand %vm273_vm5, %vm886_vm12  ;;  %v1088_v9 = vadd.s32 128, %v1085_v48 }
  0xfc   :  { %v915_v18 = vadd.f32 %v400_v16, %v368_v12  ;;  %v281_v19 = vsel %vm277_vm2, 1.0, %v647_v52  ;;  %vm313_vm7 = vmand %vm305_vm0, %vm309_vm1  ;;  %vm211_vm0 = vcmp.ge.f32.partialorder %v884_v7, %v837_v50  ;;  %vm223_vm1 = vcmp.le.f32.partialorder %v884_v7, %v841_v55 }
  0xfd   :  { %v289_v21 = vmul.f32 2.0, %v281_v19  ;;  %vm317_vm9 = vmand %vm313_vm7, %vm886_vm12  ;;  %vm263_vm2 = vcmp.ge.f32.partialorder %v921_v20, %v837_v50  ;;  %v1094_v10 = vshra.s32 %v1088_v9, 4 }
  0xfe   :  { %462 = vrot.lane.b32.xlu0 %v915_v18, %s648_s1  ;;  %412 = vrot.lane.b32.xlu1 %v915_v18, %s649_s28  ;;  %v321_v23 = vsel %vm317_vm9, 1.0, %v647_v52  ;;  %vm940_vm14 = vmand %vm345_vm3, %vm349_vm6  ;;  %vm267_vm3 = vcmp.le.f32.partialorder %v921_v20, %v841_v55  ;;  %vm303_vm9 = vcmp.ge.f32.partialorder %v944_v25, %v837_v50  ;;  %v408_v26 = vmul.f32 3.0, %v915_v18 }
  0xff   :  { %v293_v28 = vadd.f32 %v289_v21, %v253_v17  ;;  %v325_v29 = vsel %vm295_vm13, %v321_v23, 0.0  ;;  %vm357_vm15 = vmand %vm940_vm14, %vm886_vm12 }
 0x100   :  { %v329_v30 = vmul.f32 2.0, %v325_v29  ;;  %vm389_vm5 = vmand %vm381_vm10, %vm385_vm11  ;;  %v361_v34 = vsel %vm357_vm15, 1.0, %v647_v52  ;;  %vm307_vm10 = vcmp.le.f32.partialorder %v944_v25, %v841_v55  ;;  %vm254_vm11 = vcmp.ge.s32.totalorder %v682_v3, 1 }
 0x101   :  { %vm393_vm13 = vmand %vm389_vm5, %vm886_vm12 }
 0x102   :  { %v333_v32 = vadd.f32 %v329_v30, %v293_v28  ;;  %v397_v33 = vsel %vm393_vm13, 1.0, %v647_v52  ;;  %vm227_vm6 = vmand %vm211_vm0, %vm223_vm1  ;;  %vm343_vm0 = vcmp.ge.f32.partialorder %v968_v31, %v837_v50  ;;  %vm347_vm1 = vcmp.le.f32.partialorder %v968_v31, %v841_v55 }
 0x103   :  { %vm243_vm7 = vmand %vm227_vm6, %vm886_vm12  ;;  %v401_v38 = vsel %vm371_vm8, %v397_v33, 0.0  ;;  %vm379_vm13 = vcmp.ge.f32.partialorder %v978_v35, %v837_v50 }
 0x104   :  { %v369_v36 = vadd.f32 %v361_v34, %v333_v32  ;;  %v247_v37 = vsel %vm243_vm7, 1.0, %v647_v52  ;;  %vm271_vm14 = vmand %vm263_vm2, %vm267_vm3  ;;  %vm383_vm2 = vcmp.le.f32.partialorder %v978_v35, %v841_v55  ;;  %vm210_vm7 = vcmp.ge.f32.partialorder %v884_v7, %v810_v42 }
 0x105   :  { %vm275_vm15 = vmand %vm271_vm14, %vm886_vm12  ;;  %v251_v40 = vmul.f32 3.0, %v247_v37 }
 0x106   :  { %v990_v39 = vadd.f32 %v401_v38, %v369_v36  ;;  %v279_v41 = vsel %vm275_vm15, 1.0, %v647_v52  ;;  %vm311_vm5 = vmand %vm303_vm9, %vm307_vm10  ;;  %vm222_vm9 = vcmp.le.f32.partialorder %v884_v7, %v812_v43  ;;  %vm334_vm10 = vcmp.ge.s32.totalorder %v682_v3, 2 }
 0x107   :  { %v283_v44 = vsel %vm254_vm11, %v279_v41, 0.0  ;;  %vm315_vm8 = vmand %vm311_vm5, %vm886_vm12 }
 0x108   :  { %466 = vrot.lane.b32.xlu0 %v990_v39, %s648_s1  ;;  %416 = vrot.lane.b32.xlu1 %v990_v39, %s649_s28  ;;  %v287_v27 = vmul.f32 2.0, %v283_v44  ;;  %v319_v45 = vsel %vm315_vm8, 1.0, %v647_v52  ;;  %vm351_vm3 = vmand %vm343_vm0, %vm347_vm1  ;;  %vm262_vm0 = vcmp.ge.f32.partialorder %v921_v20, %v810_v42  ;;  %vm266_vm1 = vcmp.le.f32.partialorder %v921_v20, %v812_v43 }
 0x109   :  { %vm355_vm6 = vmand %vm351_vm3, %vm886_vm12  ;;  %v327_v49 = vmul.f32 2.0, %v319_v45 }
 0x10a   :  { %v291_v47 = vadd.f32 %v287_v27, %v251_v40  ;;  %v359_v50 = vsel %vm355_vm6, 1.0, %v647_v52  ;;  %vm1014_vm14 = vmand %vm379_vm13, %vm383_vm2  ;;  %vm306_vm13 = vcmp.le.f32.partialorder %v944_v25, %v812_v43  ;;  %vm342_vm6 = vcmp.ge.f32.partialorder %v968_v31, %v810_v42 }
 0x10b   :  { %vm391_vm15 = vmand %vm1014_vm14, %vm886_vm12  ;;  %v363_v54 = vsel %vm334_vm10, %v359_v50, 0.0  ;;  %vm302_vm12 = vcmp.ge.f32.partialorder %v944_v25, %v810_v42 }
 0x10c   :  { %v331_v53 = vadd.f32 %v327_v49, %v291_v47  ;;  %431 = vrot.lane.b32.xlu1 %v915_v18, %s650_s29  ;;  %vm226_vm5 = vmand %vm210_vm7, %vm222_vm9  ;;  %v395_v57 = vsel %vm391_vm15, 1.0, %v647_v52  ;;  %vm346_vm7 = vcmp.le.f32.partialorder %v968_v31, %v812_v43  ;;  %vm378_vm15 = vcmp.ge.f32.partialorder %v978_v35, %v810_v42 }
 0x10d   :  { %vm242_vm8 = vmand %vm226_vm5, %vm825_vm4  ;;  %v409_v31 = vmul.f32 3.0, %v990_v39 }
 0x10e   :  { %v367_v55 = vadd.f32 %v363_v54, %v331_v53  ;;  %v246_v56 = vsel %vm242_vm8, 1.0, %v647_v52  ;;  %vm270_vm2 = vmand %vm262_vm0, %vm266_vm1  ;;  %vm382_vm0 = vcmp.le.f32.partialorder %v978_v35, %v812_v43 }
 0x10f   :  { %vm274_vm3 = vmand %vm270_vm2, %vm825_vm4  ;;  %v250_v59 = vmul.f32 3.0, %v246_v56  ;;  %vm442_vm2 = vcmp.le.s32.totalorder %v1091_v2, 14 }
 0x110   :  { %v1044_v58 = vadd.f32 %v395_v57, %v367_v55  ;;  %435 = vrot.lane.b32.xlu1 %v990_v39, %s650_s29  ;;  %v278_v60 = vsel %vm274_vm3, 1.0, %v647_v52  ;;  %vm310_vm9 = vmand %vm302_vm12, %vm306_vm13  ;;  %vm424_vm12 = vcmp.ge.s32.totalorder %v1094_v10, 1  ;;  %vm437_vm13 = vcmp.lt.s32.totalorder %v1085_v48, 112 }
 0x111   :  { %v282_v61 = vsel %vm254_vm11, %v278_v60, 0.0  ;;  %vm314_vm14 = vmand %vm310_vm9, %vm825_vm4  ;;  %vm443_vm3 = vcmp.le.s32.totalorder %v1094_v10, 14  ;;  %vm474_vm9 = vcmp.ge.s32.totalorder %v1094_v10, 2 }
 0x112   :  { %414 = vrot.lane.b32.xlu0 %v1044_v58, %s649_s28  ;;  %v286_v62 = vmul.f32 2.0, %v282_v61  ;;  %v318_v63 = vsel %vm314_vm14, 1.0, %v647_v52  ;;  %vm350_vm1 = vmand %vm342_vm6, %vm346_vm7  ;;  %vm468_vm6 = vcmp.lt.s32.totalorder %v1085_v48, 32  ;;  %vm473_vm7 = vcmp.ge.s32.totalorder %v1091_v2, 2 }
 0x113   :  { %vm354_vm5 = vmand %vm350_vm1, %vm825_vm4  ;;  %v326_v5 = vmul.f32 2.0, %v318_v63  ;;  %vm491_vm14 = vcmp.lt.s32.totalorder %v1085_v48, 96  ;;  %vm537_vm1 = vcmp.lt.s32.totalorder %v1085_v48, 127 }
 0x114   :  { %v290_v4 = vadd.f32 %v286_v62, %v250_v59  ;;  %v358_v46 = vsel %vm354_vm5, 1.0, %v647_v52  ;;  %vm386_vm11 = vmand %vm378_vm15, %vm382_vm0  ;;  %vm496_vm15 = vcmp.le.s32.totalorder %v1091_v2, 13  ;;  %vm497_vm0 = vcmp.le.s32.totalorder %v1094_v10, 13 }
 0x115   :  { %vm390_vm8 = vmand %vm386_vm11, %vm825_vm4  ;;  %v362_v43 = vsel %vm334_vm10, %v358_v46, 0.0  ;;  %vm418_vm4 = vcmp.lt.s32.totalorder %v1085_v48, 16  ;;  %vm423_vm10 = vcmp.ge.s32.totalorder %v1091_v2, 1  ;;  %vm518_vm5 = vcmp.lt.s32.totalorder %v1085_v48, 1 }
 0x116   :  { %485 = vrot.lane.b32.xlu0 %v915_v18, %s651_s30  ;;  %v330_v42 = vadd.f32 %v326_v5, %v290_v4  ;;  %v394_v7 = vsel %vm390_vm8, 1.0, %v647_v52 }
 0x118   :  { %v366_v6 = vadd.f32 %v362_v43, %v330_v42 }
 0x11a   :  { %489 = vrot.lane.b32.xlu0 %v990_v39, %s651_s30  ;;  %v1070_v8 = vadd.f32 %v394_v7, %v366_v6 }
 0x11c   :  { %410 = vrot.lane.b32.xlu1 %v1070_v8, %s649_s28  ;;  %v406_v43 = vmul.f32 3.0, %v1070_v8 }
 0x120   :  { %429 = vrot.lane.b32.xlu1 %v1070_v8, %s650_s29 }
 0x124   :  { %433 = vrot.lane.b32.xlu1 %v1044_v58, %s650_s29 }
 0x128   :  { %460 = vrot.lane.b32.xlu1 %v1070_v8, %s648_s1 }
 0x12c   :  { %464 = vrot.lane.b32.xlu1 %v1044_v58, %s648_s1 }
 0x130   :  { %483 = vrot.lane.b32.xlu1 %v1070_v8, %s651_s30 }
 0x134   :  { %487 = vrot.lane.b32.xlu1 %v1044_v58, %s651_s30 }
 0x170   :  { %v413_v3 = vpop.permute.xlu1 %412  ;;  %v463_v52 = vpop.permute.xlu0 %462 }
 0x17a   :  { %v417_v1 = vpop.permute.xlu1 %416  ;;  %v467_v11 = vpop.permute.xlu0 %466 }
 0x17b   :  { %v420_v0 = vsel %vm418_vm4, %v413_v3, %v417_v1  ;;  %v422_v13 = vsel %vm418_vm4, %v417_v1, %v413_v3  ;;  %v472_v25 = vsel %vm468_vm6, %v467_v11, %v463_v52  ;;  %v470_v34 = vsel %vm468_vm6, %v463_v52, %v467_v11 }
 0x17c   :  { %v427_v17 = vsel %vm423_vm10, %v422_v13, 0.0  ;;  %v428_v19 = vsel %vm424_vm12, %v420_v0, 0.0  ;;  %v477_v33 = vsel %vm473_vm7, %v472_v25, 0.0  ;;  %v478_v38 = vsel %vm474_vm9, %v470_v34, 0.0 }
 0x17d   :  { %v407_v11 = vmul.f32 3.0, %v1044_v58 }
 0x17e   :  { %v432_v12 = vpop.permute.xlu1 %431 }
 0x182   :  { %v436_v14 = vpop.permute.xlu1 %435 }
 0x183   :  { %v439_v15 = vsel %vm437_vm13, %v432_v12, %v436_v14  ;;  %v441_v16 = vsel %vm437_vm13, %v436_v14, %v432_v12 }
 0x184   :  { %v415_v20 = vpop.permute.xlu0 %414  ;;  %v446_v21 = vsel %vm442_vm2, %v439_v15, 0.0  ;;  %v447_v22 = vsel %vm443_vm3, %v441_v16, 0.0 }
 0x185   :  { %v450_v23 = vadd.f32 %v446_v21, %v427_v17  ;;  %v451_v24 = vadd.f32 %v447_v22, %v428_v19  ;;  %v1210_v21 = vand.u32 15, %v1085_v48  ;;  %v1213_v22 = vand.u32 15, %v1088_v9 }
 0x187   :  { %v454_v28 = vmul.f32 2.0, %v450_v23  ;;  %v455_v29 = vmul.f32 2.0, %v451_v24  ;;  %vm542_vm11 = vcmp.le.s32.totalorder %v1210_v21, 14  ;;  %vm543_vm8 = vcmp.le.s32.totalorder %v1213_v22, 14 }
 0x188   :  { %v486_v30 = vpop.permute.xlu0 %485 }
 0x189   :  { %v458_v32 = vadd.f32 %v454_v28, %v408_v26  ;;  %v459_v35 = vadd.f32 %v455_v29, %v409_v31 }
 0x18b   :  { %v481_v18 = vadd.f32 %v477_v33, %v458_v32  ;;  %v482_v41 = vadd.f32 %v478_v38, %v459_v35 }
 0x18c   :  { %v490_v36 = vpop.permute.xlu0 %489 }
 0x18d   :  { %v493_v37 = vsel %vm491_vm14, %v486_v30, %v490_v36  ;;  %v495_v44 = vsel %vm491_vm14, %v490_v36, %v486_v30 }
 0x18e   :  { %v500_v39 = vsel %vm496_vm15, %v493_v37, 0.0  ;;  %v411_v40 = vpop.permute.xlu1 %410  ;;  %v501_v45 = vsel %vm497_vm0, %v495_v44, 0.0 }
 0x18f   :  { %v1140_v27 = vadd.f32 %v500_v39, %v481_v18  ;;  %v1146_v49 = vadd.f32 %v501_v45, %v482_v41  ;;  %v421_v53 = vsel %vm418_vm4, %v415_v20, %v411_v40  ;;  %v419_v59 = vsel %vm418_vm4, %v411_v40, %v415_v20 }
 0x190   :  { %v425_v57 = vsel %vm423_vm10, %v421_v53, 0.0  ;;  %v426_v63 = vsel %vm424_vm12, %v419_v59, 0.0  ;;  %vm523_vm4 = vcmp.ge.s32.totalorder %v1210_v21, 1  ;;  %vm524_vm10 = vcmp.ge.s32.totalorder %v1213_v22, 1 }
 0x191   :  { %512 = vrot.lane.b32.xlu0 %v1140_v27, %s652_s3  ;;  %vm568_vm12 = vcmp.lt.s32.totalorder %v1085_v48, 2  ;;  %v509_v40 = vmul.f32 3.0, %v1146_v49  ;;  %v508_v41 = vmul.f32 3.0, %v1140_v27 }
 0x192   :  { %v430_v47 = vpop.permute.xlu1 %429 }
 0x195   :  { %516 = vrot.lane.b32.xlu0 %v1146_v49, %s652_s3 }
 0x196   :  { %v434_v50 = vpop.permute.xlu1 %433 }
 0x197   :  { %v438_v51 = vsel %vm437_vm13, %v430_v47, %v434_v50  ;;  %v440_v56 = vsel %vm437_vm13, %v434_v50, %v430_v47  ;;  %vm573_vm13 = vcmp.ge.s32.totalorder %v1210_v21, 2 }
 0x198   :  { %v444_v54 = vsel %vm442_vm2, %v438_v51, 0.0  ;;  %v445_v61 = vsel %vm443_vm3, %v440_v56, 0.0  ;;  %vm574_vm2 = vcmp.ge.s32.totalorder %v1213_v22, 2  ;;  %vm591_vm3 = vcmp.lt.s32.totalorder %v1085_v48, 126 }
 0x199   :  { %531 = vrot.lane.b32.xlu0 %v1140_v27, %s653_s4  ;;  %v448_v60 = vadd.f32 %v444_v54, %v425_v57  ;;  %v449_v4 = vadd.f32 %v445_v61, %v426_v63 }
 0x19a   :  { %v461_v55 = vpop.permute.xlu1 %460 }
 0x19b   :  { %v452_v5 = vmul.f32 2.0, %v448_v60  ;;  %v453_v7 = vmul.f32 2.0, %v449_v4 }
 0x19d   :  { %535 = vrot.lane.b32.xlu0 %v1146_v49, %s653_s4  ;;  %v456_v3 = vadd.f32 %v452_v5, %v406_v43  ;;  %v457_v15 = vadd.f32 %v453_v7, %v407_v11 }
 0x19e   :  { %v465_v62 = vpop.permute.xlu1 %464 }
 0x19f   :  { %v471_v46 = vsel %vm468_vm6, %v465_v62, %v461_v55  ;;  %v469_v52 = vsel %vm468_vm6, %v461_v55, %v465_v62  ;;  %vm596_vm6 = vcmp.le.s32.totalorder %v1210_v21, 13 }
 0x1a0   :  { %v475_v6 = vsel %vm473_vm7, %v471_v46, 0.0  ;;  %v476_v13 = vsel %vm474_vm9, %v469_v52, 0.0  ;;  %vm597_vm7 = vcmp.le.s32.totalorder %v1213_v22, 13 }
 0x1a1   :  { %562 = vrot.lane.b32.xlu0 %v1140_v27, %s654_s5  ;;  %v479_v12 = vadd.f32 %v475_v6, %v456_v3  ;;  %v480_v17 = vadd.f32 %v476_v13, %v457_v15 }
 0x1a2   :  { %v484_v42 = vpop.permute.xlu1 %483 }
 0x1a5   :  { %566 = vrot.lane.b32.xlu0 %v1146_v49, %s654_s5 }
 0x1a6   :  { %v488_v1 = vpop.permute.xlu1 %487 }
 0x1a7   :  { %v492_v0 = vsel %vm491_vm14, %v484_v42, %v488_v1  ;;  %v494_v8 = vsel %vm491_vm14, %v488_v1, %v484_v42 }
 0x1a8   :  { %v498_v14 = vsel %vm496_vm15, %v492_v0, 0.0  ;;  %v499_v58 = vsel %vm497_vm0, %v494_v8, 0.0 }
 0x1a9   :  { %v1188_v16 = vadd.f32 %v498_v14, %v479_v12  ;;  %585 = vrot.lane.b32.xlu0 %v1140_v27, %s655_s6  ;;  %v1195_v19 = vadd.f32 %v499_v58, %v480_v17 }
 0x1ab   :  { %510 = vrot.lane.b32.xlu1 %v1188_v16, %s652_s3 }
 0x1ad   :  { %589 = vrot.lane.b32.xlu0 %v1146_v49, %s655_s6 }
 0x1af   :  { %514 = vrot.lane.b32.xlu1 %v1195_v19, %s652_s3 }
 0x1b3   :  { %529 = vrot.lane.b32.xlu1 %v1188_v16, %s653_s4 }
 0x1b7   :  { %533 = vrot.lane.b32.xlu1 %v1195_v19, %s653_s4 }
 0x1bb   :  { %560 = vrot.lane.b32.xlu1 %v1188_v16, %s654_s5 }
 0x1bf   :  { %564 = vrot.lane.b32.xlu1 %v1195_v19, %s654_s5 }
 0x1c3   :  { %583 = vrot.lane.b32.xlu1 %v1188_v16, %s655_s6 }
 0x1c7   :  { %587 = vrot.lane.b32.xlu1 %v1195_v19, %s655_s6 }
 0x203   :  { %v513_v2 = vpop.permute.xlu0 %512 }
 0x207   :  { %v517_v10 = vpop.permute.xlu0 %516 }
 0x208   :  { %v520_v9 = vsel %vm518_vm5, %v513_v2, %v517_v10  ;;  %v522_v26 = vsel %vm518_vm5, %v517_v10, %v513_v2  ;;  %v507_v2 = vmul.f32 3.0, %v1195_v19  ;;  %v506_v10 = vmul.f32 3.0, %v1188_v16 }
 0x209   :  { %v527_v31 = vsel %vm523_vm4, %v522_v26, 0.0  ;;  %v528_v32 = vsel %vm524_vm10, %v520_v9, 0.0 }
 0x20b   :  { %v532_v20 = vpop.permute.xlu0 %531 }
 0x20f   :  { %v536_v23 = vpop.permute.xlu0 %535 }
 0x210   :  { %v539_v24 = vsel %vm537_vm1, %v532_v20, %v536_v23  ;;  %v541_v25 = vsel %vm537_vm1, %v536_v23, %v532_v20 }
 0x211   :  { %v546_v28 = vsel %vm542_vm11, %v539_v24, 0.0  ;;  %v547_v29 = vsel %vm543_vm8, %v541_v25, 0.0 }
 0x212   :  { %v550_v33 = vadd.f32 %v546_v28, %v527_v31  ;;  %v551_v34 = vadd.f32 %v547_v29, %v528_v32 }
 0x213   :  { %v563_v30 = vpop.permute.xlu0 %562 }
 0x214   :  { %v554_v18 = vmul.f32 2.0, %v550_v33  ;;  %v555_v36 = vmul.f32 2.0, %v551_v34 }
 0x216   :  { %v559_v50 = vadd.f32 %v555_v36, %v509_v40  ;;  %v558_v51 = vadd.f32 %v554_v18, %v508_v41 }
 0x217   :  { %v567_v35 = vpop.permute.xlu0 %566 }
 0x218   :  { %v570_v37 = vsel %vm568_vm12, %v563_v30, %v567_v35  ;;  %v572_v38 = vsel %vm568_vm12, %v567_v35, %v563_v30 }
 0x219   :  { %v577_v44 = vsel %vm573_vm13, %v572_v38, 0.0  ;;  %v578_v45 = vsel %vm574_vm2, %v570_v37, 0.0 }
 0x21a   :  { %v581_v54 = vadd.f32 %v577_v44, %v558_v51  ;;  %v582_v49 = vadd.f32 %v578_v45, %v559_v50 }
 0x21b   :  { %v586_v39 = vpop.permute.xlu0 %585 }
 0x21d   :  { %v511_v47 = vpop.permute.xlu1 %510 }
 0x21f   :  { %v590_v53 = vpop.permute.xlu0 %589 }
 0x220   :  { %v593_v27 = vsel %vm591_vm3, %v586_v39, %v590_v53  ;;  %v595_v55 = vsel %vm591_vm3, %v590_v53, %v586_v39 }
 0x221   :  { %v515_v56 = vpop.permute.xlu1 %514  ;;  %v600_v57 = vsel %vm596_vm6, %v593_v27, 0.0  ;;  %v601_v59 = vsel %vm597_vm7, %v595_v55, 0.0 }
 0x222   :  { %v604_v60 = vadd.f32 %v600_v57, %v581_v54  ;;  %v605_v61 = vadd.f32 %v601_v59, %v582_v49  ;;  %v519_v43 = vsel %vm518_vm5, %v511_v47, %v515_v56  ;;  %v521_v6 = vsel %vm518_vm5, %v515_v56, %v511_v47 }
 0x223   :  { %v525_v1 = vsel %vm523_vm4, %v521_v6, 0.0  ;;  %v526_v11 = vsel %vm524_vm10, %v519_v43, 0.0 }
 0x224   :  { %v608_v62 = vmul.f32 0.0013717421, %v604_v60  ;;  %v609_v63 = vmul.f32 0.0013717421, %v605_v61 }
 0x225   :  { %v530_v4 = vpop.permute.xlu1 %529 }
 0x226   :  { %612 = vst [vmem:[%s1308_s2 + $0x10] sm:$0xff] %v608_v62  ;;  %613 = vst [vmem:[%s1308_s2 + $0x18] sm:$0xff] %v609_v63 }
 0x229   :  { %v534_v5 = vpop.permute.xlu1 %533 }
 0x22a   :  { %v538_v46 = vsel %vm537_vm1, %v530_v4, %v534_v5  ;;  %v540_v42 = vsel %vm537_vm1, %v534_v5, %v530_v4 }
 0x22b   :  { %v544_v7 = vsel %vm542_vm11, %v538_v46, 0.0  ;;  %v545_v3 = vsel %vm543_vm8, %v540_v42, 0.0 }
 0x22c   :  { %v548_v12 = vadd.f32 %v544_v7, %v525_v1  ;;  %v549_v0 = vadd.f32 %v545_v3, %v526_v11 }
 0x22d   :  { %v561_v52 = vpop.permute.xlu1 %560 }
 0x22e   :  { %v552_v13 = vmul.f32 2.0, %v548_v12  ;;  %v553_v14 = vmul.f32 2.0, %v549_v0 }
 0x230   :  { %v557_v24 = vadd.f32 %v553_v14, %v507_v2  ;;  %v556_v25 = vadd.f32 %v552_v13, %v506_v10 }
 0x231   :  { %v565_v8 = vpop.permute.xlu1 %564 }
 0x232   :  { %v569_v15 = vsel %vm568_vm12, %v561_v52, %v565_v8  ;;  %v571_v58 = vsel %vm568_vm12, %v565_v8, %v561_v52 }
 0x233   :  { %v575_v20 = vsel %vm573_vm13, %v571_v58, 0.0  ;;  %v576_v23 = vsel %vm574_vm2, %v569_v15, 0.0 }
 0x234   :  { %v579_v26 = vadd.f32 %v575_v20, %v556_v25  ;;  %v580_v28 = vadd.f32 %v576_v23, %v557_v24 }
 0x235   :  { %v584_v17 = vpop.permute.xlu1 %583 }
 0x239   :  { %v588_v9 = vpop.permute.xlu1 %587 }
 0x23a   :  { %v592_v29 = vsel %vm591_vm3, %v584_v17, %v588_v9  ;;  %v594_v30 = vsel %vm591_vm3, %v588_v9, %v584_v17 }
 0x23b   :  { %v598_v16 = vsel %vm596_vm6, %v592_v29, 0.0  ;;  %v599_v19 = vsel %vm597_vm7, %v594_v30, 0.0 }
 0x23c   :  { %v602_v31 = vadd.f32 %v598_v16, %v579_v26  ;;  %v603_v32 = vadd.f32 %v599_v19, %v580_v28 }
 0x23e   :  { %v606_v33 = vmul.f32 0.0013717421, %v602_v31  ;;  %v607_v34 = vmul.f32 0.0013717421, %v603_v32 }
 0x240   :  { %610 = vst [vmem:[%s1308_s2] sm:$0xff] %v606_v33  ;;  %611 = vst [vmem:[%s1308_s2 + $0x8] sm:$0xff] %v607_v34 }

</bundles_post_ra>
